<compile_context>
chip_gen: v7x
topology: tpu7x:2x2x1
jax: 0.10.0
libtpu: 0.0.40
codegen_flags: <defaults>
</compile_context>

<pallas_src>
import math

import jax
import jax.numpy as jnp
from jax.experimental import pallas as pl
from jax.experimental.pallas import tpu as pltpu


def cs_forward_kernel(x_ref, ct_ref, o_ref, acc_ref):
    """One (j, k) grid step of  o = x_row @ CT'  (all constants pre-folded into CT').

    x_ref:   (1, tk)   reduction slice of the flattened input row (compute dtype)
    ct_ref:  (tk, tn)  fused circulant tile (compute dtype)
    o_ref:   (1, tn)   output columns for this j (resident across the k axis)
    acc_ref: (1, tn)   f32 VMEM accumulator
    """
    k = pl.program_id(1)

    @pl.when(k == 0)
    def _():
        acc_ref[...] = jnp.zeros_like(acc_ref)

    acc_ref[...] += jnp.dot(x_ref[...], ct_ref[...],
                            preferred_element_type=jnp.float32)

    @pl.when(k == pl.num_programs(1) - 1)
    def _():
        o_ref[...] = acc_ref[...].astype(o_ref.dtype)


def _pick_tile(n, target):
    """Largest multiple of 128 that divides n and is <= target; else n (full extent)."""
    if n <= target:
        return n
    t = (target // 128) * 128
    while t >= 128:
        if n % t == 0:
            return t
        t -= 128
    return n


def make_cs_forward(A, sign_pattern, indices, H, W, *,
                    compute_dtype=jnp.bfloat16, tk_target=512, tn_target=2048):
    """Returns fn(x: (H, W) f32) -> (1, 1, H, W) f32 matching the torch forward."""
    N = H * W
    A = jnp.asarray(A, jnp.float32).reshape(N)
    sign_pattern = jnp.asarray(sign_pattern, jnp.float32).reshape(N)
    indices = jnp.asarray(indices, jnp.int32)

    # --- setup (plain JAX, runs once): fused circulant with all constants folded ---
    m = jnp.arange(N)
    shift_idx = (m[None, :] - m[:, None]) % N            # [m, n] -> (n - m) mod N
    mask = jnp.ones((N,), jnp.float32).at[indices].set(0.0)
    inv_sqrt_n = 1.0 / math.sqrt(N)
    ct = (sign_pattern[:, None]
          * A[shift_idx]
          * (mask * inv_sqrt_n)[None, :]).astype(compute_dtype)   # (N, N)

    # --- tiling: reduction (tk) and output-column (tn) tiles, 128-aligned ---
    tk = _pick_tile(N, tk_target)
    tn = _pick_tile(N, tn_target)
    grid = (N // tn, N // tk)   # (output columns -> parallel, reduction -> arbitrary, last)

    call = pl.pallas_call(
        cs_forward_kernel,
        out_shape=jax.ShapeDtypeStruct((1, N), jnp.float32),
        grid_spec=pltpu.PrefetchScalarGridSpec(
            num_scalar_prefetch=0,
            grid=grid,
            in_specs=[
                pl.BlockSpec((1, tk), lambda j, k: (0, k)),    # x slice (reduction)
                pl.BlockSpec((tk, tn), lambda j, k: (k, j)),   # fused circulant tile
            ],
            out_specs=pl.BlockSpec((1, tn), lambda j, k: (0, j)),
            scratch_shapes=[pltpu.VMEM((1, tn), jnp.float32)],
        ),
        compiler_params=pltpu.CompilerParams(
            dimension_semantics=("parallel", "arbitrary"),
            vmem_limit_bytes=64 << 20),
    )

    def forward(x):
        x_row = x.reshape(1, N).astype(compute_dtype)
        y = call(x_row, ct)
        return y.reshape(1, 1, H, W)

    return forward


def _reference_forward(x, A, sign_pattern, indices, H, W):
    # Direct transcription of the torch forward with jnp.fft (for verification).
    N = H * W
    xf = x.reshape(N).astype(jnp.float32)
    z = jnp.fft.ifft(
        jnp.fft.fft(xf * sign_pattern, norm="ortho") * jnp.fft.fft(A, norm="ortho"),
        norm="ortho",
    )
    z = z.at[indices].set(0.0)
    return jnp.real(z).reshape(1, 1, H, W)


if __name__ == "__main__":
    H = W = 16
    N = H * W                       # n_input
    n_measurements = 64

    key = jax.random.PRNGKey(0)
    k_x, k_a, k_s, k_i = jax.random.split(key, 4)

    x = jax.random.normal(k_x, (H, W), dtype=jnp.float32)
    A = jax.random.normal(k_a, (N,), dtype=jnp.float32)
    sign_pattern = jnp.where(
        jax.random.bernoulli(k_s, 0.5, (N,)), 1.0, -1.0).astype(jnp.float32)
    indices = jax.random.permutation(k_i, N)[:n_measurements].astype(jnp.int32)

    y_ref = _reference_forward(x, A, sign_pattern, indices, H, W)

    # f32-streamed circulant: must match the FFT reference tightly.
    fwd_f32 = make_cs_forward(A, sign_pattern, indices, H, W,
                              compute_dtype=jnp.float32)
    y32 = jax.block_until_ready(fwd_f32(x))
    assert y32.shape == (1, 1, H, W)
    assert jnp.allclose(y32, y_ref, atol=1e-3, rtol=1e-3), (
        float(jnp.max(jnp.abs(y32 - y_ref))))

    # bf16-streamed circulant (default fast path): f32 accumulation on the MXU,
    # error bounded by bf16 quantization of the operands.
    fwd_bf16 = make_cs_forward(A, sign_pattern, indices, H, W)
    y16 = jax.block_until_ready(fwd_bf16(x))
    assert y16.shape == (1, 1, H, W)
    assert jnp.allclose(y16, y_ref, atol=3e-2, rtol=3e-2), (
        float(jnp.max(jnp.abs(y16 - y_ref))))

    print("KERNEL_OK")
</pallas_src>

<mosaic_0001>
module attributes {stable_mosaic.version = 11 : i64} {
  func.func @cs_forward_kernel(%arg0: i32, %arg1: i32, %arg2: memref<1x256xf32, #tpu.memory_space<vmem>>, %arg3: memref<256x256xf32, #tpu.memory_space<vmem>>, %arg4: memref<1x256xf32, #tpu.memory_space<vmem>>, %arg5: memref<1x256xf32, #tpu.memory_space<vmem>>) attributes {dimension_semantics = [#tpu.dimension_semantics<parallel>, #tpu.dimension_semantics<arbitrary>], iteration_bounds = array<i64: 1, 1>, scalar_prefetch = 0 : i64, scratch_operands = 1 : i64, tpu.core_type = #tpu.core_type<tc>, window_params = [{transform_indices = @transform_0, window_bounds = array<i64: 1, 256>}, {transform_indices = @transform_1, window_bounds = array<i64: 256, 256>}, {transform_indices = @transform_2, window_bounds = array<i64: 1, 256>}]} {
    %c0_i32 = arith.constant 0 : i32
    %0 = arith.cmpi eq, %arg1, %c0_i32 : i32
    %1 = arith.extui %0 : i1 to i32
    %c0_i32_0 = arith.constant 0 : i32
    %2 = arith.cmpi ne, %1, %c0_i32_0 : i32
    scf.if %2 {
      %cst_10 = arith.constant 0.000000e+00 : f32
      %12 = vector.broadcast %cst_10 : f32 to vector<1x256xf32>
      %c0_11 = arith.constant 0 : index
      %c0_12 = arith.constant 0 : index
      %13 = vector.load %arg5[%c0_11, %c0_12] : memref<1x256xf32, #tpu.memory_space<vmem>>, vector<1x256xf32>
      tpu.vector_store %arg5[%c0_11, %c0_12], %12 {strides = array<i32>} : memref<1x256xf32, #tpu.memory_space<vmem>>, vector<1x256xf32>,
    } else {
    }
    %c0 = arith.constant 0 : index
    %c0_1 = arith.constant 0 : index
    %3 = vector.load %arg5[%c0, %c0_1] : memref<1x256xf32, #tpu.memory_space<vmem>>, vector<1x256xf32>
    %c0_2 = arith.constant 0 : index
    %c0_3 = arith.constant 0 : index
    %4 = vector.load %arg2[%c0_2, %c0_3] : memref<1x256xf32, #tpu.memory_space<vmem>>, vector<1x256xf32>
    %c0_4 = arith.constant 0 : index
    %c0_5 = arith.constant 0 : index
    %5 = vector.load %arg3[%c0_4, %c0_5] : memref<256x256xf32, #tpu.memory_space<vmem>>, vector<256x256xf32>
    %cst = arith.constant dense<0.000000e+00> : vector<1x256xf32>
    %6 = tpu.matmul %4, %5, %cst {dimension_numbers = #tpu.dot_dimension_numbers<[1], [0], [0], [1], [0, 0, 1, 1], [], []>} : vector<1x256xf32>, vector<256x256xf32>, vector<1x256xf32> -> vector<1x256xf32>
    %7 = arith.addf %3, %6 : vector<1x256xf32>
    %c0_6 = arith.constant 0 : index
    %c0_7 = arith.constant 0 : index
    %8 = vector.load %arg5[%c0_6, %c0_7] : memref<1x256xf32, #tpu.memory_space<vmem>>, vector<1x256xf32>
    tpu.vector_store %arg5[%c0_6, %c0_7], %7 {strides = array<i32>} : memref<1x256xf32, #tpu.memory_space<vmem>>, vector<1x256xf32>,
    %c0_i32_8 = arith.constant 0 : i32
    %9 = arith.cmpi eq, %arg1, %c0_i32_8 : i32
    %10 = arith.extui %9 : i1 to i32
    %c0_i32_9 = arith.constant 0 : i32
    %11 = arith.cmpi ne, %10, %c0_i32_9 : i32
    scf.if %11 {
      %c0_10 = arith.constant 0 : index
      %c0_11 = arith.constant 0 : index
      %12 = vector.load %arg5[%c0_10, %c0_11] : memref<1x256xf32, #tpu.memory_space<vmem>>, vector<1x256xf32>
      %c0_12 = arith.constant 0 : index
      %c0_13 = arith.constant 0 : index
      %13 = vector.load %arg4[%c0_12, %c0_13] : memref<1x256xf32, #tpu.memory_space<vmem>>, vector<1x256xf32>
      tpu.vector_store %arg4[%c0_12, %c0_13], %12 {strides = array<i32>} : memref<1x256xf32, #tpu.memory_space<vmem>>, vector<1x256xf32>,
    } else {
    }
    return
  }
  func.func @transform_0(%arg0: i32, %arg1: i32) -> (i32, i32) {
    %c0_i32 = arith.constant 0 : i32
    %c0_i32_0 = arith.constant 0 : i32
    return %c0_i32, %arg1 : i32, i32
  }
  func.func @transform_1(%arg0: i32, %arg1: i32) -> (i32, i32) {
    %c0_i32 = arith.constant 0 : i32
    return %arg1, %arg0 : i32, i32
  }
  func.func @transform_2(%arg0: i32, %arg1: i32) -> (i32, i32) {
    %c0_i32 = arith.constant 0 : i32
    %c0_i32_0 = arith.constant 0 : i32
    return %c0_i32, %arg0 : i32, i32
  }
}

</mosaic_0001>

<bundles_post_ra>
// kernel: tpu_custom_call.1
= control target key start
LH: loop header
LB: loop body
LE: loop exit
PB: predicated region body
PF: predicated region fallthrough
CT: control target
= control target key end

     0   :  { %7 = vsyncpa [#allocation4], 0  ;;  %s469_s0 = inlined_call_operand.hbm [shape: f32[1,256], index: 0, kind: input, shape index: {}]   ;;  %s470_s1 = inlined_call_operand.hbm [shape: f32[256,256], index: 1, kind: input, shape index: {}]   ;;  %s471_s2 = inlined_call_operand.hbm [shape: f32[1,256], index: 2, kind: output, shape index: {}]  }
   0x1   :  { %8 = vsyncpa [#allocation7], 0 }
   0x2   :  { %9 = vsyncpa [#allocation5], 0  ;;  %s383_s9 = smov [#allocation3]   ;;  %s384_s11 = smov [#allocation6]  }
   0x3   :  { %s16_s10 = sshll.u32 %s383_s9, 4  ;;  %s25_s12 = sshll.u32 %s384_s11, 4  ;;  %s17_s10 = int_to_ptr.vmem [resolvable:$true] %s16_s10  ;;  %s405_s12 = int_to_ptr.vmem [resolvable:$true] %s25_s12 }
   0x4   :  { %s311_s15 = scalar_lea.hbm %s469_s0, 32 }
   0x5   :  { %p312_p0 = scmp.ne.s32.totalorder %s469_s0, %s311_s15  ;;  %p315_p1 = scmp.lt.u32.totalorder %s311_s15, %s469_s0 }
   0x7   :  { %p317_p2 = pnand %p315_p1, %p312_p0 }
   0x9   :  { %320 = shalt.err (!%p317_p2)
}
   0xa   :  { %s321_s20 = scalar_lea.vmem %s17_s10, 32  ;;  %p326_p4 = scmp.lt.s32.totalorder %s17_s10, %s17_s10 }
   0xb   :  { %p322_p3 = scmp.ne.s32.totalorder %s17_s10, %s321_s20  ;;  %p327_p5 = scmp.lt.s32.totalorder %s321_s20, %s321_s20 }
   0xd   :  { %p328_p6 = por %p327_p5, %p326_p4 }
   0xf   :  { %p329_p7 = pnand %p328_p6, %p322_p3 }
  0x11   :  { %332 = shalt.err (!%p329_p7)
}
  0x12   :  { %19 = dma.hbm_to_vmem [thread:$0]  %s469_s0, 32, %s17_s10, [#allocation4]  }
  0x13   :  { %s333_s25 = scalar_lea.hbm %s470_s1, 8192 }
  0x14   :  { %p334_p8 = scmp.ne.s32.totalorder %s470_s1, %s333_s25  ;;  %p337_p9 = scmp.lt.u32.totalorder %s333_s25, %s470_s1 }
  0x16   :  { %p339_p10 = pnand %p337_p9, %p334_p8 }
  0x18   :  { %342 = shalt.err (!%p339_p10)
}
  0x19   :  { %s343_s30 = scalar_lea.vmem %s405_s12, 8192  ;;  %p348_p12 = scmp.lt.s32.totalorder %s405_s12, %s405_s12 }
  0x1a   :  { %p344_p11 = scmp.ne.s32.totalorder %s405_s12, %s343_s30  ;;  %p349_p13 = scmp.lt.s32.totalorder %s343_s30, %s343_s30 }
  0x1c   :  { %p350_p0 = por %p349_p13, %p348_p12 }
  0x1e   :  { %p351_p1 = pnand %p350_p0, %p344_p11 }
  0x20   :  { %354 = shalt.err (!%p351_p1)
}
  0x21   :  { %s385_s0 = smov 256   ;;  %s386_s3 = smov 16  }
  0x22   :  { %31 = dma.hbm_to_vmem [thread:$0]  %s470_s1, 8192, %s405_s12, [#allocation7], %s385_s0, %s385_s0, %s386_s3  }
  0x23   :  { %377 = dma.done.wait [#allocation4], 32  }
  0x24   :  { %378 = vsyncadd [#allocation4], 4294967264 }
  0x25   :  { %379 = dma.done.wait [#allocation7], 8192  }
  0x26   :  { %380 = vsyncadd [#allocation7], 4294959104  ;;  %v50_v0 = vld [vmem:[#allocation6 + $0x8] sm:$0xff]  ;;  %v52_v1 = vld [vmem:[#allocation6 + $0x18] sm:$0xff]  ;;  %v42_v25 = vlaneseq  ;;  %s389_s1 = smov [#allocation8]  }
  0x27   :  { %v49_v2 = vld [vmem:[#allocation6] sm:$0xff]  ;;  %v240_v3 = vpack.c.bf16 %v52_v1, %v50_v0  ;;  %v51_v4 = vld [vmem:[#allocation6 + $0x10] sm:$0xff]  ;;  %v54_v5 = vld [vmem:[#allocation6 + $0x28] sm:$0xff]  ;;  %s230_s6 = sshll.u32 %s389_s1, 4  ;;  %s231_s6 = int_to_ptr.vmem [resolvable:$true] %s230_s6 }
  0x28   :  { %v56_v6 = vld [vmem:[#allocation6 + $0x38] sm:$0xff]  ;;  %v242_v7 = vpack.c.bf16 %v51_v4, %v49_v2  ;;  %v53_v9 = vld [vmem:[#allocation6 + $0x20] sm:$0xff]  ;;  %v55_v10 = vld [vmem:[#allocation6 + $0x30] sm:$0xff]  ;;  %v437_v32 = vshrl.u32 %v42_v25, 7  ;;  %vm446_vm0 = vcmp.lt.s32.totalorder %v42_v25, 256  ;;  %s355_s7 = scalar_lea.vmem %s231_s6, 32  ;;  %p360_p3 = scmp.lt.s32.totalorder %s231_s6, %s231_s6 }
  0x29   :  { %v244_v8 = vpack.c.bf16 %v56_v6, %v54_v5  ;;  %v58_v11 = vld [vmem:[#allocation6 + $0x48] sm:$0xff]  ;;  %241 = vmatprep.subr.bf16.mxu0 %v240_v3  ;;  %v60_v12 = vld [vmem:[#allocation6 + $0x58] sm:$0xff]  ;;  %v246_v13 = vpack.c.bf16 %v55_v10, %v53_v9  ;;  %v57_v15 = vld [vmem:[#allocation6 + $0x40] sm:$0xff]  ;;  %p356_p2 = scmp.ne.s32.totalorder %s231_s6, %s355_s7  ;;  %p361_p4 = scmp.lt.s32.totalorder %s355_s7, %s355_s7 }
  0x2a   :  { %243 = vmatpush1.bf16.msra.mxu0 %v242_v7  ;;  %v248_v14 = vpack.c.bf16 %v60_v12, %v58_v11  ;;  %v59_v16 = vld [vmem:[#allocation6 + $0x50] sm:$0xff]  ;;  %v62_v17 = vld [vmem:[#allocation6 + $0x68] sm:$0xff]  ;;  %v64_v18 = vld [vmem:[#allocation6 + $0x78] sm:$0xff]  ;;  %v120_v39 = vsub.s32 1, %v437_v32 }
  0x2b   :  { %245 = vmatprep.subr.bf16.mxu0 %v244_v8  ;;  %v250_v19 = vpack.c.bf16 %v59_v16, %v57_v15  ;;  %v252_v20 = vpack.c.bf16 %v64_v18, %v62_v17  ;;  %v61_v21 = vld [vmem:[#allocation6 + $0x60] sm:$0xff]  ;;  %v63_v22 = vld [vmem:[#allocation6 + $0x70] sm:$0xff]  ;;  %v66_v23 = vld [vmem:[#allocation6 + $0x88] sm:$0xff]  ;;  %p362_p5 = por %p361_p4, %p360_p3 }
  0x2c   :  { %v68_v24 = vld [vmem:[#allocation6 + $0x98] sm:$0xff]  ;;  %v254_v26 = vpack.c.bf16 %v63_v22, %v61_v21  ;;  %v65_v28 = vld [vmem:[#allocation6 + $0x80] sm:$0xff]  ;;  %v67_v29 = vld [vmem:[#allocation6 + $0x90] sm:$0xff] }
  0x2d   :  { %v256_v27 = vpack.c.bf16 %v68_v24, %v66_v23  ;;  %v70_v30 = vld [vmem:[#allocation6 + $0xa8] sm:$0xff]  ;;  %v72_v31 = vld [vmem:[#allocation6 + $0xb8] sm:$0xff]  ;;  %v258_v33 = vpack.c.bf16 %v67_v29, %v65_v28  ;;  %v69_v35 = vld [vmem:[#allocation6 + $0xa0] sm:$0xff]  ;;  %p363_p6 = pnand %p362_p5, %p356_p2 }
  0x2e   :  { %247 = vmatpush1.bf16.msra.mxu0 %v246_v13  ;;  %v260_v34 = vpack.c.bf16 %v72_v31, %v70_v30  ;;  %v71_v36 = vld [vmem:[#allocation6 + $0xb0] sm:$0xff]  ;;  %v74_v37 = vld [vmem:[#allocation6 + $0xc8] sm:$0xff]  ;;  %v76_v38 = vld [vmem:[#allocation6 + $0xd8] sm:$0xff] }
  0x2f   :  { %249 = vmatprep.subr.bf16.mxu0 %v248_v14  ;;  %v262_v40 = vpack.c.bf16 %v71_v36, %v69_v35  ;;  %v264_v41 = vpack.c.bf16 %v76_v38, %v74_v37  ;;  %v73_v42 = vld [vmem:[#allocation6 + $0xc0] sm:$0xff]  ;;  %v75_v43 = vld [vmem:[#allocation6 + $0xd0] sm:$0xff]  ;;  %v440_v44 = vld [vmem:[#allocation3] sm:$0x3]  ;;  %v116_v38 = vsub.s32 0, %v437_v32 }
  0x30   :  { %v78_v45 = vld [vmem:[#allocation6 + $0xe8] sm:$0xff]  ;;  %v80_v46 = vld [vmem:[#allocation6 + $0xf8] sm:$0xff]  ;;  %v121_v47 = vrot.slane %v440_v44, %v120_v39  ;;  %v266_v48 = vpack.c.bf16 %v75_v43, %v73_v42  ;;  %v77_v50 = vld [vmem:[#allocation6 + $0xe0] sm:$0xff]  ;;  %v387_v42 = vmov 0.0   ;;  %v388_v43 = vmov 1966171168  }
  0x31   :  { %v268_v49 = vpack.c.bf16 %v80_v46, %v78_v45  ;;  %v79_v51 = vld [vmem:[#allocation6 + $0xf0] sm:$0xff]  ;;  %v82_v52 = vld [vmem:[#allocation6 + $0x108] sm:$0xff]  ;;  %v84_v53 = vld [vmem:[#allocation6 + $0x118] sm:$0xff]  ;;  %46 = vst.msk [vmem:[#allocation2] sm:$0x3] %vm446_vm0, %v387_v42  ;;  %v199_v45 = vunpack.c.l.s4 %v388_v43 }
  0x32   :  { %251 = vmatpush1.bf16.msra.mxu0 %v250_v19  ;;  %188 = vmatprep.mubr.f32.mxu0 %v121_v47  ;;  %v270_v54 = vpack.c.bf16 %v79_v51, %v77_v50  ;;  %v272_v55 = vpack.c.bf16 %v84_v53, %v82_v52  ;;  %v81_v56 = vld [vmem:[#allocation6 + $0x100] sm:$0xff]  ;;  %v83_v57 = vld [vmem:[#allocation6 + $0x110] sm:$0xff]  ;;  %v86_v58 = vld [vmem:[#allocation6 + $0x128] sm:$0xff] }
  0x33   :  { %253 = vmatprep.subr.bf16.mxu0 %v252_v20  ;;  %v88_v59 = vld [vmem:[#allocation6 + $0x138] sm:$0xff]  ;;  %v274_v60 = vpack.c.bf16 %v83_v57, %v81_v56  ;;  %v85_v62 = vld [vmem:[#allocation6 + $0x120] sm:$0xff]  ;;  %v87_v63 = vld [vmem:[#allocation6 + $0x130] sm:$0xff]  ;;  %v200_v46 = vunpack.c.0.s8 %v199_v45 }
  0x34   :  { %v276_v61 = vpack.c.bf16 %v88_v59, %v86_v58  ;;  %v90_v0 = vld [vmem:[#allocation6 + $0x148] sm:$0xff]  ;;  %v92_v1 = vld [vmem:[#allocation6 + $0x158] sm:$0xff]  ;;  %v278_v2 = vpack.c.bf16 %v87_v63, %v85_v62  ;;  %v89_v4 = vld [vmem:[#allocation6 + $0x140] sm:$0xff] }
  0x35   :  { %v280_v3 = vpack.c.bf16 %v92_v1, %v90_v0  ;;  %v91_v5 = vld [vmem:[#allocation6 + $0x150] sm:$0xff]  ;;  %v94_v6 = vld [vmem:[#allocation6 + $0x168] sm:$0xff]  ;;  %v96_v7 = vld [vmem:[#allocation6 + $0x178] sm:$0xff] }
  0x36   :  { %255 = vmatpush1.bf16.msra.mxu0 %v254_v26  ;;  %v282_v8 = vpack.c.bf16 %v91_v5, %v89_v4  ;;  %v284_v9 = vpack.c.bf16 %v96_v7, %v94_v6  ;;  %v93_v10 = vld [vmem:[#allocation6 + $0x160] sm:$0xff]  ;;  %v95_v11 = vld [vmem:[#allocation6 + $0x170] sm:$0xff]  ;;  %v98_v12 = vld [vmem:[#allocation6 + $0x188] sm:$0xff] }
  0x37   :  { %257 = vmatprep.subr.bf16.mxu0 %v256_v27  ;;  %v100_v13 = vld [vmem:[#allocation6 + $0x198] sm:$0xff]  ;;  %v286_v14 = vpack.c.bf16 %v95_v11, %v93_v10  ;;  %v97_v16 = vld [vmem:[#allocation6 + $0x180] sm:$0xff]  ;;  %v99_v17 = vld [vmem:[#allocation6 + $0x190] sm:$0xff] }
  0x38   :  { %v288_v15 = vpack.c.bf16 %v100_v13, %v98_v12  ;;  %v102_v18 = vld [vmem:[#allocation6 + $0x1a8] sm:$0xff]  ;;  %v104_v19 = vld [vmem:[#allocation6 + $0x1b8] sm:$0xff]  ;;  %v290_v20 = vpack.c.bf16 %v99_v17, %v97_v16  ;;  %v101_v22 = vld [vmem:[#allocation6 + $0x1a0] sm:$0xff] }
  0x39   :  { %v292_v21 = vpack.c.bf16 %v104_v19, %v102_v18  ;;  %v103_v23 = vld [vmem:[#allocation6 + $0x1b0] sm:$0xff]  ;;  %v106_v24 = vld [vmem:[#allocation6 + $0x1c8] sm:$0xff]  ;;  %v108_v26 = vld [vmem:[#allocation6 + $0x1d8] sm:$0xff] }
  0x3a   :  { %259 = vmatpush1.bf16.msra.mxu0 %v258_v33  ;;  %v294_v27 = vpack.c.bf16 %v103_v23, %v101_v22  ;;  %v296_v28 = vpack.c.bf16 %v108_v26, %v106_v24  ;;  %v105_v29 = vld [vmem:[#allocation6 + $0x1c0] sm:$0xff]  ;;  %v107_v30 = vld [vmem:[#allocation6 + $0x1d0] sm:$0xff]  ;;  %v110_v31 = vld [vmem:[#allocation6 + $0x1e8] sm:$0xff] }
  0x3b   :  { %261 = vmatprep.subr.bf16.mxu0 %v260_v34  ;;  %v112_v33 = vld [vmem:[#allocation6 + $0x1f8] sm:$0xff]  ;;  %v298_v34 = vpack.c.bf16 %v107_v30, %v105_v29  ;;  %v109_v36 = vld [vmem:[#allocation6 + $0x1e0] sm:$0xff]  ;;  %v111_v37 = vld [vmem:[#allocation6 + $0x1f0] sm:$0xff] }
  0x3c   :  { %v300_v35 = vpack.c.bf16 %v112_v33, %v110_v31  ;;  %v302_v39 = vpack.c.bf16 %v111_v37, %v109_v36  ;;  %v47_v51 = vld [vmem:[#allocation2] sm:$0x3] }
  0x3e   :  { %263 = vmatpush1.bf16.msra.mxu0 %v262_v40  ;;  %v117_v40 = vrot.slane %v440_v44, %v116_v38 }
  0x3f   :  { %265 = vmatprep.subr.bf16.mxu0 %v264_v41 }
  0x42   :  { %267 = vmatpush1.bf16.msra.mxu0 %v266_v48  ;;  %v203_v48 = vsub.s32 %v200_v46, %v437_v32 }
  0x43   :  { %269 = vmatprep.subr.bf16.mxu0 %v268_v49 }
  0x46   :  { %271 = vmatpush1.bf16.msra.mxu0 %v270_v54 }
  0x47   :  { %273 = vmatprep.subr.bf16.mxu0 %v272_v55 }
  0x4a   :  { %275 = vmatpush1.bf16.msra.mxu0 %v274_v60 }
  0x4b   :  { %277 = vmatprep.subr.bf16.mxu0 %v276_v61 }
  0x4e   :  { %279 = vmatpush1.bf16.msra.mxu0 %v278_v2 }
  0x4f   :  { %281 = vmatprep.subr.bf16.mxu0 %v280_v3 }
  0x52   :  { %283 = vmatpush1.bf16.msra.mxu0 %v282_v8 }
  0x53   :  { %285 = vmatprep.subr.bf16.mxu0 %v284_v9 }
  0x56   :  { %287 = vmatpush1.bf16.msra.mxu0 %v286_v14 }
  0x57   :  { %289 = vmatprep.subr.bf16.mxu0 %v288_v15 }
  0x5a   :  { %291 = vmatpush1.bf16.msra.mxu0 %v290_v20 }
  0x5b   :  { %293 = vmatprep.subr.bf16.mxu0 %v292_v21 }
  0x5e   :  { %295 = vmatpush1.bf16.msra.mxu0 %v294_v27 }
  0x5f   :  { %297 = vmatprep.subr.bf16.mxu0 %v296_v28 }
  0x62   :  { %299 = vmatpush1.bf16.msra.mxu0 %v298_v34 }
  0x63   :  { %301 = vmatprep.subr.bf16.mxu0 %v300_v35 }
  0x66   :  { %303 = vmatpush1.bf16.msra.mxu0 %v302_v39 }
  0x69   :  { %189 = vmatmul.mubr.f32.vlgmr.msra.gmra.mrb[0].mxu0 %v117_v40 }
 0x13c   :  { %v190_v47 = vpop.f32.mrb[0].mxu0 }
 0x13d   :  { %v192_v49 = vpop.f32.mrb[1].mxu0 }
 0x13e   :  { %v197_v50 = vcombine.low %v190_v47, %v192_v49 }
 0x140   :  { %v204_v44 = vrot.slane %v197_v50, %v203_v48 }
 0x142   :  { %v211_v52 = vrot.slane %v204_v44, %v203_v48 }
 0x144   :  { %v213_v53 = vadd.f32 %v211_v52, %v47_v51 }
 0x146   :  { %218 = vst.msk [vmem:[#allocation2] sm:$0x3] %vm446_vm0, %v213_v53 }
 0x14d   :  { %v222_v25 = vld [vmem:[#allocation2] sm:$0x3] }
 0x14e   :  { %223 = vst.msk [vmem:[#allocation8] sm:$0x3] %vm446_vm0, %v222_v25 }
 0x14f   :  { %366 = shalt.err (!%p363_p6)
}
 0x150   :  { %s367_s10 = scalar_lea.hbm %s471_s2, 32 }
 0x151   :  { %p368_p7 = scmp.ne.s32.totalorder %s471_s2, %s367_s10  ;;  %p371_p8 = scmp.lt.u32.totalorder %s367_s10, %s471_s2 }
 0x153   :  { %p373_p9 = pnand %p371_p8, %p368_p7 }
 0x155   :  { %376 = shalt.err (!%p373_p9)
}
 0x156   :  { %233 = dma.vmem_to_hbm [thread:$0]  %s231_s6, 32, %s471_s2, [#allocation5]  }
 0x157   :  { %381 = dma.done.wait [#allocation5], 32  }
 0x158   :  { %382 = vsyncadd [#allocation5], 4294967264 }
 0x159   :  { %237 = vsyncpa [#allocation4], 1 }
 0x15a   :  { %238 = vsyncpa [#allocation7], 1 }
 0x15b   :  { %239 = vsyncpa [#allocation5], 1 }

</bundles_post_ra>
